<compile_context>
chip_gen: v6e
topology: v6e:2x2x1
jax: 0.10.0
libtpu: 0.0.40
codegen_flags: <defaults>
</compile_context>

<pallas_src>
import functools

import jax
import jax.numpy as jnp
from jax.experimental import pallas as pl
from jax.experimental.pallas import tpu as pltpu


def _burst_kernel(data_ref, spikes_ref, mem_ref, th_ref, nspike_ref,
                  *, num_steps, beta, init_th, inv_batch, spike_dtype):
    # Single VMEM load of `data` for the whole coding window (only needed for
    # the t == 0 init and the rare no-fire reset).
    data = data_ref[...]

    def step(t, carry):
        mem, th = carry
        fire = mem >= th
        out_f32 = fire.astype(jnp.float32)
        # ONE full-tensor XLU reduction per step: `s` doubles as the
        # "any spike fired" flag and as the (scaled) num_spike value.
        s = jnp.sum(out_f32)

        new_mem = jnp.where(fire, mem - th, mem)
        new_th = jnp.where(fire, th * beta, init_th)
        # No-spike reset: mem <- data.  State is carried in vregs (not refs)
        # across the unrolled loop, so a single scalar-broadcast select is
        # cheaper here than the pl.when-on-ref alternative, which would force
        # ref-resident state (2 extra VMEM loads + 2 extra stores per step).
        new_mem = jnp.where(s > 0.0, new_mem, data)

        # Spikes are exactly 0/1 -> narrow (bf16) store; halves HBM writeback
        # of the dominant [T, R, C] output and vst-slot pressure.
        spikes_ref[t] = out_f32.astype(spike_dtype)
        nspike_ref[t] = s * inv_batch              # scalar straight to SMEM
        return new_mem, new_th

    mem0 = data
    th0 = jnp.full_like(data, init_th)
    # Whole window fused into one invocation; T is small, so fully unroll.
    mem, th = jax.lax.fori_loop(0, num_steps, step, (mem0, th0), unroll=True)
    # mem/th hit their VMEM output blocks (and HBM) exactly once.
    mem_ref[...] = mem
    th_ref[...] = th


def _slab_shape(total):
    """Pick a lane/sublane-dense 2-D view of the flattened tensor."""
    # Prefer 16 rows (native bf16 sublane tile -> unmasked bf16 spike stores);
    # 8 rows still gives full f32 sublane occupancy.  None -> caller falls
    # back to the natural (N, D) shape.
    for rows in (16, 8):
        if total % (rows * 128) == 0:
            return rows, total // rows
    return None


@functools.partial(
    jax.jit, static_argnames=("num_steps", "beta", "init_th", "inv_batch"))
def _burst_encode_slab(slab, *, num_steps, beta, init_th, inv_batch):
    """Run all `num_steps` BURST steps in one fused kernel invocation.

    Args:
      slab: float32 [R, C] lane-dense view of the flattened input, in [0, 1].
    Returns:
      spikes    [T, R, C] bfloat16 (exact 0/1)
      mem       [R, C]    float32  final membrane state
      th        [R, C]    float32  final threshold state
      num_spike [T]       float32  per-step sum(spikes) / batch
    """
    rows, cols = slab.shape
    spike_dtype = jnp.bfloat16

    kernel = functools.partial(
        _burst_kernel,
        num_steps=int(num_steps), beta=float(beta), init_th=float(init_th),
        inv_batch=float(inv_batch), spike_dtype=spike_dtype)

    # Whole-tensor-resident VMEM budget: data + mem + th (f32) + spikes (bf16)
    # plus working set.  Raise above the 16/32 MiB scoped defaults, cap at
    # 64 MiB so the request is also valid on v7x.
    state_bytes = rows * cols * 4
    spikes_bytes = num_steps * rows * cols * 2
    footprint = 3 * state_bytes + spikes_bytes
    vmem_limit = int(min(64 * 1024 * 1024, max(32 * 1024 * 1024, 2 * footprint)))
    # TODO(synk): once `footprint` approaches the per-generation VMEM budget
    # (64 MiB on v7x, 128 MiB on v5e/v6e), switch to a row-tiled grid
    # ("parallel" rows x "arbitrary" time; uses v7x's 2nd TensorCore) with
    # SMEM partial sums and a deferred GLOBAL no-fire reset pass.

    vmem_spec = pl.BlockSpec(memory_space=pltpu.VMEM)
    return pl.pallas_call(
        kernel,
        in_specs=[vmem_spec],                        # data: DMA'd once
        out_specs=(
            vmem_spec,                               # spikes [T, R, C]
            vmem_spec,                               # final mem
            vmem_spec,                               # final th
            pl.BlockSpec(memory_space=pltpu.SMEM),   # per-step num_spike
        ),
        out_shape=(
            jax.ShapeDtypeStruct((num_steps, rows, cols), spike_dtype),
            jax.ShapeDtypeStruct((rows, cols), jnp.float32),
            jax.ShapeDtypeStruct((rows, cols), jnp.float32),
            jax.ShapeDtypeStruct((num_steps,), jnp.float32),
        ),
        compiler_params=pltpu.CompilerParams(vmem_limit_bytes=vmem_limit),
    )(slab)


class BurstJax:
    """Stateful wrapper mirroring PyTorch BURST.forward(input, t).

    The full coding window is computed once (at t == 0 / first call) by the
    fused kernel; later calls index into the cached per-step outputs.
    self.mem / self.th hold the state after the full window.
    """

    def __init__(self, data_num_steps, beta=2.0, init_th=0.125):
        self.num_steps = int(data_num_steps)
        self.beta = float(beta)
        self.init_th = float(init_th)
        self.mem = None
        self.th = None
        self.num_spike = None
        self._spikes = None
        self._nspike = None
        self._shape = None

    def __call__(self, x_nchw, t):
        N, C, H, W = x_nchw.shape
        if t == 0 or self._spikes is None:
            total = N * C * H * W
            slab_shape = _slab_shape(total)
            if slab_shape is None:
                # TODO(synk): pad odd element counts up to an (8,128) tile
                # instead of accepting partial sublane occupancy.
                slab_shape = (N, C * H * W)
            slab = x_nchw.astype(jnp.float32).reshape(slab_shape)
            spikes, mem, th, nspike = _burst_encode_slab(
                slab, num_steps=self.num_steps, beta=self.beta,
                init_th=self.init_th, inv_batch=1.0 / float(N))
            self._spikes = spikes              # bf16, exact 0/1
            self._nspike = nspike
            self._shape = (N, C, H, W)
            self.mem = mem.reshape(N, C, H, W)
            self.th = th.reshape(N, C, H, W)
        self.num_spike = self._nspike[t]
        # Downstream consumers (count_spike / losses) expect float32.
        return self._spikes[t].astype(jnp.float32).reshape(self._shape)

    @staticmethod
    def count_spike(input_spike):
        return jnp.sum(input_spike, axis=1)


if __name__ == "__main__":
    key = jax.random.PRNGKey(0)
    N, C, H, W = 2, 4, 16, 16
    T = 4
    # data transformed into [0, 1] as the module docstring states
    x = jax.random.uniform(key, (N, C, H, W), dtype=jnp.float32)

    enc = BurstJax(data_num_steps=T, beta=2.0, init_th=0.125)

    # pure-JAX reference (mirrors the PyTorch module step by step)
    def ref_steps(x, steps, beta=2.0, init_th=0.125):
        data = x.reshape(N, -1)
        mem = data
        th = jnp.full_like(data, init_th)
        outs, nspks = [], []
        for _ in range(steps):
            fire = mem >= th
            out = jnp.where(fire, 1.0, 0.0)
            mem = mem - jnp.where(fire, th, 0.0)
            th = jnp.where(fire, th * beta, init_th)
            mem = jnp.where(jnp.max(out) > 0, mem, data)
            outs.append(out.reshape(N, C, H, W))
            nspks.append(jnp.sum(out) / N)
        return outs, nspks, mem.reshape(N, C, H, W), th.reshape(N, C, H, W)

    ref_out, ref_nspk, ref_mem, ref_th = ref_steps(x, T)

    ok = True
    for t in range(T):
        spikes = enc(x, t)
        jax.block_until_ready(spikes)
        if not jnp.allclose(spikes, ref_out[t]):
            ok = False
        if not jnp.allclose(enc.num_spike, ref_nspk[t]):
            ok = False
    if not jnp.allclose(enc.mem, ref_mem) or not jnp.allclose(enc.th, ref_th):
        ok = False

    assert ok, "mismatch vs reference"
    print("KERNEL_OK")
</pallas_src>

<mosaic_0001>
module attributes {stable_mosaic.version = 11 : i64} {
  func.func @_burst_kernel(%arg0: memref<16x128xf32, #tpu.memory_space<vmem>>, %arg1: memref<4x16x128xbf16, #tpu.memory_space<vmem>>, %arg2: memref<16x128xf32, #tpu.memory_space<vmem>>, %arg3: memref<16x128xf32, #tpu.memory_space<vmem>>, %arg4: memref<4xf32, #tpu.memory_space<smem>>) attributes {dimension_semantics = [], scalar_prefetch = 0 : i64, scratch_operands = 0 : i64, tpu.core_type = #tpu.core_type<tc>} {
    %c0 = arith.constant 0 : index
    %c0_0 = arith.constant 0 : index
    %0 = vector.load %arg0[%c0, %c0_0] : memref<16x128xf32, #tpu.memory_space<vmem>>, vector<16x128xf32>
    %cst = arith.constant 1.250000e-01 : f32
    %1 = vector.broadcast %cst : f32 to vector<16x128xf32>
    %c0_i32 = arith.constant 0 : i32
    %2 = arith.cmpf oge, %0, %1 : vector<16x128xf32>
    %3 = arith.extui %2 : vector<16x128xi1> to vector<16x128xi32>
    %4 = arith.sitofp %3 : vector<16x128xi32> to vector<16x128xf32>
    %5 = vector.shape_cast %4 : vector<16x128xf32> to vector<1x16x128xf32>
    %cst_1 = arith.constant dense<0.000000e+00> : vector<1xf32>
    %6 = vector.multi_reduction <add>, %5, %cst_1 [1, 2] : vector<1x16x128xf32> to vector<1xf32>
    %7 = vector.shape_cast %6 : vector<1xf32> to vector<1x1x1xf32>
    %8 = vector.extract %7[0, 0, 0] : f32 from vector<1x1x1xf32>
    %9 = arith.subf %0, %1 : vector<16x128xf32>
    %10 = arith.select %2, %9, %0 : vector<16x128xi1>, vector<16x128xf32>
    %cst_2 = arith.constant 2.000000e+00 : f32
    %11 = vector.broadcast %cst_2 : f32 to vector<16x128xf32>
    %12 = arith.mulf %1, %11 : vector<16x128xf32>
    %cst_3 = arith.constant 1.250000e-01 : f32
    %13 = vector.broadcast %cst_3 : f32 to vector<16x128xf32>
    %14 = arith.select %2, %12, %13 : vector<16x128xi1>, vector<16x128xf32>
    %cst_4 = arith.constant 0.000000e+00 : f32
    %15 = arith.cmpf ogt, %8, %cst_4 : f32
    %16 = arith.select %15, %10, %0 : vector<16x128xf32>
    %17 = arith.truncf %4 : vector<16x128xf32> to vector<16x128xbf16>
    %18 = arith.index_cast %c0_i32 : i32 to index
    %c0_5 = arith.constant 0 : index
    %c0_6 = arith.constant 0 : index
    %19 = vector.load %arg1[%18, %c0_5, %c0_6] : memref<4x16x128xbf16, #tpu.memory_space<vmem>>, vector<1x16x128xbf16>
    %20 = vector.shape_cast %19 : vector<1x16x128xbf16> to vector<16x128xbf16>
    %21 = vector.shape_cast %17 : vector<16x128xbf16> to vector<1x16x128xbf16>
    tpu.vector_store %arg1[%18, %c0_5, %c0_6], %21 {strides = array<i32>} : memref<4x16x128xbf16, #tpu.memory_space<vmem>>, vector<1x16x128xbf16>,
    %cst_7 = arith.constant 5.000000e-01 : f32
    %22 = arith.mulf %8, %cst_7 : f32
    %23 = arith.index_cast %c0_i32 : i32 to index
    %24 = memref.load %arg4[%23] : memref<4xf32, #tpu.memory_space<smem>>
    memref.store %22, %arg4[%23] : memref<4xf32, #tpu.memory_space<smem>>
    %c1_i32 = arith.constant 1 : i32
    %25 = arith.cmpf oge, %16, %14 : vector<16x128xf32>
    %26 = arith.extui %25 : vector<16x128xi1> to vector<16x128xi32>
    %27 = arith.sitofp %26 : vector<16x128xi32> to vector<16x128xf32>
    %28 = vector.shape_cast %27 : vector<16x128xf32> to vector<1x16x128xf32>
    %cst_8 = arith.constant dense<0.000000e+00> : vector<1xf32>
    %29 = vector.multi_reduction <add>, %28, %cst_8 [1, 2] : vector<1x16x128xf32> to vector<1xf32>
    %30 = vector.shape_cast %29 : vector<1xf32> to vector<1x1x1xf32>
    %31 = vector.extract %30[0, 0, 0] : f32 from vector<1x1x1xf32>
    %32 = arith.subf %16, %14 : vector<16x128xf32>
    %33 = arith.select %25, %32, %16 : vector<16x128xi1>, vector<16x128xf32>
    %cst_9 = arith.constant 2.000000e+00 : f32
    %34 = vector.broadcast %cst_9 : f32 to vector<16x128xf32>
    %35 = arith.mulf %14, %34 : vector<16x128xf32>
    %cst_10 = arith.constant 1.250000e-01 : f32
    %36 = vector.broadcast %cst_10 : f32 to vector<16x128xf32>
    %37 = arith.select %25, %35, %36 : vector<16x128xi1>, vector<16x128xf32>
    %cst_11 = arith.constant 0.000000e+00 : f32
    %38 = arith.cmpf ogt, %31, %cst_11 : f32
    %39 = arith.select %38, %33, %0 : vector<16x128xf32>
    %40 = arith.truncf %27 : vector<16x128xf32> to vector<16x128xbf16>
    %41 = arith.index_cast %c1_i32 : i32 to index
    %c0_12 = arith.constant 0 : index
    %c0_13 = arith.constant 0 : index
    %42 = vector.load %arg1[%41, %c0_12, %c0_13] : memref<4x16x128xbf16, #tpu.memory_space<vmem>>, vector<1x16x128xbf16>
    %43 = vector.shape_cast %42 : vector<1x16x128xbf16> to vector<16x128xbf16>
    %44 = vector.shape_cast %40 : vector<16x128xbf16> to vector<1x16x128xbf16>
    tpu.vector_store %arg1[%41, %c0_12, %c0_13], %44 {strides = array<i32>} : memref<4x16x128xbf16, #tpu.memory_space<vmem>>, vector<1x16x128xbf16>,
    %cst_14 = arith.constant 5.000000e-01 : f32
    %45 = arith.mulf %31, %cst_14 : f32
    %46 = arith.index_cast %c1_i32 : i32 to index
    %47 = memref.load %arg4[%46] : memref<4xf32, #tpu.memory_space<smem>>
    memref.store %45, %arg4[%46] : memref<4xf32, #tpu.memory_space<smem>>
    %c2_i32 = arith.constant 2 : i32
    %48 = arith.cmpf oge, %39, %37 : vector<16x128xf32>
    %49 = arith.extui %48 : vector<16x128xi1> to vector<16x128xi32>
    %50 = arith.sitofp %49 : vector<16x128xi32> to vector<16x128xf32>
    %51 = vector.shape_cast %50 : vector<16x128xf32> to vector<1x16x128xf32>
    %cst_15 = arith.constant dense<0.000000e+00> : vector<1xf32>
    %52 = vector.multi_reduction <add>, %51, %cst_15 [1, 2] : vector<1x16x128xf32> to vector<1xf32>
    %53 = vector.shape_cast %52 : vector<1xf32> to vector<1x1x1xf32>
    %54 = vector.extract %53[0, 0, 0] : f32 from vector<1x1x1xf32>
    %55 = arith.subf %39, %37 : vector<16x128xf32>
    %56 = arith.select %48, %55, %39 : vector<16x128xi1>, vector<16x128xf32>
    %cst_16 = arith.constant 2.000000e+00 : f32
    %57 = vector.broadcast %cst_16 : f32 to vector<16x128xf32>
    %58 = arith.mulf %37, %57 : vector<16x128xf32>
    %cst_17 = arith.constant 1.250000e-01 : f32
    %59 = vector.broadcast %cst_17 : f32 to vector<16x128xf32>
    %60 = arith.select %48, %58, %59 : vector<16x128xi1>, vector<16x128xf32>
    %cst_18 = arith.constant 0.000000e+00 : f32
    %61 = arith.cmpf ogt, %54, %cst_18 : f32
    %62 = arith.select %61, %56, %0 : vector<16x128xf32>
    %63 = arith.truncf %50 : vector<16x128xf32> to vector<16x128xbf16>
    %64 = arith.index_cast %c2_i32 : i32 to index
    %c0_19 = arith.constant 0 : index
    %c0_20 = arith.constant 0 : index
    %65 = vector.load %arg1[%64, %c0_19, %c0_20] : memref<4x16x128xbf16, #tpu.memory_space<vmem>>, vector<1x16x128xbf16>
    %66 = vector.shape_cast %65 : vector<1x16x128xbf16> to vector<16x128xbf16>
    %67 = vector.shape_cast %63 : vector<16x128xbf16> to vector<1x16x128xbf16>
    tpu.vector_store %arg1[%64, %c0_19, %c0_20], %67 {strides = array<i32>} : memref<4x16x128xbf16, #tpu.memory_space<vmem>>, vector<1x16x128xbf16>,
    %cst_21 = arith.constant 5.000000e-01 : f32
    %68 = arith.mulf %54, %cst_21 : f32
    %69 = arith.index_cast %c2_i32 : i32 to index
    %70 = memref.load %arg4[%69] : memref<4xf32, #tpu.memory_space<smem>>
    memref.store %68, %arg4[%69] : memref<4xf32, #tpu.memory_space<smem>>
    %c3_i32 = arith.constant 3 : i32
    %71 = arith.cmpf oge, %62, %60 : vector<16x128xf32>
    %72 = arith.extui %71 : vector<16x128xi1> to vector<16x128xi32>
    %73 = arith.sitofp %72 : vector<16x128xi32> to vector<16x128xf32>
    %74 = vector.shape_cast %73 : vector<16x128xf32> to vector<1x16x128xf32>
    %cst_22 = arith.constant dense<0.000000e+00> : vector<1xf32>
    %75 = vector.multi_reduction <add>, %74, %cst_22 [1, 2] : vector<1x16x128xf32> to vector<1xf32>
    %76 = vector.shape_cast %75 : vector<1xf32> to vector<1x1x1xf32>
    %77 = vector.extract %76[0, 0, 0] : f32 from vector<1x1x1xf32>
    %78 = arith.subf %62, %60 : vector<16x128xf32>
    %79 = arith.select %71, %78, %62 : vector<16x128xi1>, vector<16x128xf32>
    %cst_23 = arith.constant 2.000000e+00 : f32
    %80 = vector.broadcast %cst_23 : f32 to vector<16x128xf32>
    %81 = arith.mulf %60, %80 : vector<16x128xf32>
    %cst_24 = arith.constant 1.250000e-01 : f32
    %82 = vector.broadcast %cst_24 : f32 to vector<16x128xf32>
    %83 = arith.select %71, %81, %82 : vector<16x128xi1>, vector<16x128xf32>
    %cst_25 = arith.constant 0.000000e+00 : f32
    %84 = arith.cmpf ogt, %77, %cst_25 : f32
    %85 = arith.select %84, %79, %0 : vector<16x128xf32>
    %86 = arith.truncf %73 : vector<16x128xf32> to vector<16x128xbf16>
    %87 = arith.index_cast %c3_i32 : i32 to index
    %c0_26 = arith.constant 0 : index
    %c0_27 = arith.constant 0 : index
    %88 = vector.load %arg1[%87, %c0_26, %c0_27] : memref<4x16x128xbf16, #tpu.memory_space<vmem>>, vector<1x16x128xbf16>
    %89 = vector.shape_cast %88 : vector<1x16x128xbf16> to vector<16x128xbf16>
    %90 = vector.shape_cast %86 : vector<16x128xbf16> to vector<1x16x128xbf16>
    tpu.vector_store %arg1[%87, %c0_26, %c0_27], %90 {strides = array<i32>} : memref<4x16x128xbf16, #tpu.memory_space<vmem>>, vector<1x16x128xbf16>,
    %cst_28 = arith.constant 5.000000e-01 : f32
    %91 = arith.mulf %77, %cst_28 : f32
    %92 = arith.index_cast %c3_i32 : i32 to index
    %93 = memref.load %arg4[%92] : memref<4xf32, #tpu.memory_space<smem>>
    memref.store %91, %arg4[%92] : memref<4xf32, #tpu.memory_space<smem>>
    %c4_i32 = arith.constant 4 : i32
    %c0_29 = arith.constant 0 : index
    %c0_30 = arith.constant 0 : index
    %94 = vector.load %arg2[%c0_29, %c0_30] : memref<16x128xf32, #tpu.memory_space<vmem>>, vector<16x128xf32>
    tpu.vector_store %arg2[%c0_29, %c0_30], %85 {strides = array<i32>} : memref<16x128xf32, #tpu.memory_space<vmem>>, vector<16x128xf32>,
    %c0_31 = arith.constant 0 : index
    %c0_32 = arith.constant 0 : index
    %95 = vector.load %arg3[%c0_31, %c0_32] : memref<16x128xf32, #tpu.memory_space<vmem>>, vector<16x128xf32>
    tpu.vector_store %arg3[%c0_31, %c0_32], %83 {strides = array<i32>} : memref<16x128xf32, #tpu.memory_space<vmem>>, vector<16x128xf32>,
    return
  }
}

</mosaic_0001>

<bundles_post_ra>
// kernel: _burst_encode_slab.1
= control target key start
LH: loop header
LB: loop body
LE: loop exit
PB: predicated region body
PF: predicated region fallthrough
CT: control target
= control target key end

     0   :  { %10 = vsyncpa [#allocation3], 0  ;;  %s532_s0 = inlined_call_operand.hbm [shape: f32[16,128], index: 0, kind: input, shape index: {}]   ;;  %s533_s1 = inlined_call_operand.hbm [shape: bf16[4,16,128], index: 1, kind: output, shape index: {0}]   ;;  %s534_s2 = inlined_call_operand.hbm [shape: f32[16,128], index: 2, kind: output, shape index: {1}]   ;;  %s535_s3 = inlined_call_operand.hbm [shape: f32[16,128], index: 3, kind: output, shape index: {2}]   ;;  %s536_s4 = inlined_call_operand.hbm [shape: f32[4], index: 4, kind: output, shape index: {3}]  }
   0x1   :  { %11 = vsyncpa [#allocation4], 0 }
   0x2   :  { %12 = vsyncpa [#allocation8], 0 }
   0x3   :  { %13 = vsyncpa [#allocation5], 0  ;;  %s422_s15 = smov [#allocation2]  }
   0x4   :  { %s19_s16 = sshll.u32 %s422_s15, 4  ;;  %s20_s16 = int_to_ptr.vmem [resolvable:$true] %s19_s16 }
   0x5   :  { %s334_s17 = scalar_lea.vmem %s20_s16, 256  ;;  %p339_p1 = scmp.lt.s32.totalorder %s20_s16, %s20_s16 }
   0x6   :  { %p335_p0 = scmp.ne.s32.totalorder %s20_s16, %s334_s17  ;;  %p340_p2 = scmp.lt.s32.totalorder %s334_s17, %s334_s17 }
   0x8   :  { %p341_p3 = por %p340_p2, %p339_p1 }
   0xa   :  { %p342_p4 = pnand %p341_p3, %p335_p0 }
   0xc   :  { %345 = shalt.err (!%p342_p4)
}
   0xd   :  { %s423_s18 = smov 128   ;;  %s424_s19 = smov 8  }
   0xe   :  { %25 = dma.hbm_to_vmem [thread:$0]  %s532_s0, 256, %s20_s16, [#allocation3], %s423_s18, %s423_s18, %s424_s19  }
   0xf   :  { %414 = dma.done.wait [#allocation3], 256  }
  0x10   :  { %415 = vsyncadd [#allocation3], 4294967040  ;;  %v464_v0 = vld [vmem:[#allocation2] sm:$0xff]  ;;  %v466_v1 = vld [vmem:[#allocation2 + $0x8] sm:$0xff]  ;;  %v425_v2 = vmov 0.0   ;;  %v426_v18 = vmov 0.125  }
  0x11   :  { %vm31_vm0 = vcmp.ge.f32.partialorder %v464_v0, 0.125  ;;  %vm32_vm1 = vcmp.ge.f32.partialorder %v466_v1, 0.125  ;;  %v271_v14 = vadd.f32 -0.125, %v464_v0  ;;  %v272_v15 = vadd.f32 -0.125, %v466_v1  ;;  %s427_s30 = smov [#allocation6]  }
  0x12   :  { %v269_v3 = vsel %vm31_vm0, 1.0, %v425_v2  ;;  %v270_v4 = vsel %vm32_vm1, 1.0, %v425_v2  ;;  %v51_v19 = vsel %vm31_vm0, 0.25, %v426_v18  ;;  %v52_v20 = vsel %vm32_vm1, 0.25, %v426_v18  ;;  %s213_s5 = sshll.u32 %s427_s30, 4  ;;  %s214_s5 = int_to_ptr.vmem [resolvable:$true] %s213_s5 }
  0x13   :  { %v37_v5 = vadd.f32 %v270_v4, %v269_v3  ;;  %v296_v6 = vpack.c.bf16 %v270_v4, %v269_v3  ;;  %v49_v16 = vsel %vm31_vm0, %v271_v14, %v464_v0  ;;  %v50_v17 = vsel %vm32_vm1, %v272_v15, %v466_v1  ;;  %s346_s6 = scalar_lea.vmem %s214_s5, 512  ;;  %p351_p9 = scmp.lt.s32.totalorder %s214_s5, %s214_s5 }
  0x14   :  { %v92_v39 = vmul.f32 2.0, %v51_v19  ;;  %v93_v40 = vmul.f32 2.0, %v52_v20  ;;  %p347_p8 = scmp.ne.s32.totalorder %s214_s5, %s346_s6  ;;  %p352_p10 = scmp.lt.s32.totalorder %s346_s6, %s346_s6 }
  0x15   :  { %297 = vst [vmem:[#allocation6] sm:$0xff] %v296_v6   ;;  %38 = vadd.xlane.f32.xlu0 %v37_v5 }
  0x16   :  { %p353_p11 = por %p352_p10, %p351_p9 }
  0x18   :  { %p354_p12 = pnand %p353_p11, %p347_p8 }
  0x9e   :  { %v39_v7 = vpop.xlane.xlu0 %38 }
  0x9f   :  { %v40_v8 = vrot.slane %v39_v7, 4 }
  0xa1   :  { %v41_v9 = vadd.f32 %v40_v8, %v39_v7 }
  0xa3   :  { %v42_v10 = vrot.slane %v41_v9, 2 }
  0xa5   :  { %v43_v11 = vadd.f32 %v42_v10, %v41_v9 }
  0xa7   :  { %v44_v12 = vrot.slane %v43_v11, 1 }
  0xa9   :  { %v45_v13 = vadd.f32 %v44_v12, %v43_v11 }
  0xab   :  { %307 = vpush %v45_v13 }
  0xdc   :  { %s308_s0 = spop %307 }
  0xdd   :  { %p53_p5 = scmp.gt.f32.partialorder %s308_s0, 0.0  ;;  %s69_s22 = smul.f32 0.5, %s308_s0 }
  0xdf   :  { %s54_s23 = scalar_select %p53_p5, 1, 0 }
  0xe0   :  { %71 = sst [smem:[#allocation10]] %s69_s22 }
  0xe1   :  { %v55_v21 = vstv %s54_s23 }
  0xe2   :  { %vm56_vm2 = vcmp.eq.s32.totalorder %v55_v21, 1 }
  0xe3   :  { %v57_v22 = vsel %vm56_vm2, %v49_v16, %v464_v0  ;;  %v58_v23 = vsel %vm56_vm2, %v50_v17, %v466_v1 }
  0xe4   :  { %v88_v24 = vsub.f32 %v57_v22, %v51_v19  ;;  %v89_v25 = vsub.f32 %v58_v23, %v52_v20  ;;  %vm72_vm3 = vcmp.ge.f32.partialorder %v57_v22, %v51_v19  ;;  %vm73_vm4 = vcmp.ge.f32.partialorder %v58_v23, %v52_v20 }
  0xe5   :  { %v275_v26 = vsel %vm72_vm3, 1.0, %v425_v2  ;;  %v276_v27 = vsel %vm73_vm4, 1.0, %v425_v2  ;;  %v94_v44 = vsel %vm72_vm3, %v92_v39, 0.125  ;;  %v95_v45 = vsel %vm73_vm4, %v93_v40, 0.125 }
  0xe6   :  { %v78_v28 = vadd.f32 %v276_v27, %v275_v26  ;;  %v90_v29 = vsel %vm72_vm3, %v88_v24, %v57_v22  ;;  %v91_v30 = vsel %vm73_vm4, %v89_v25, %v58_v23  ;;  %v299_v31 = vpack.c.bf16 %v276_v27, %v275_v26 }
  0xe7   :  { %v136_v61 = vmul.f32 2.0, %v94_v44  ;;  %v137_v62 = vmul.f32 2.0, %v95_v45 }
  0xe8   :  { %300 = vst [vmem:[#allocation6 + $0x8] sm:$0xff] %v299_v31   ;;  %79 = vadd.xlane.f32.xlu0 %v78_v28 }
 0x171   :  { %v80_v32 = vpop.xlane.xlu0 %79 }
 0x172   :  { %v81_v33 = vrot.slane %v80_v32, 4 }
 0x174   :  { %v82_v34 = vadd.f32 %v81_v33, %v80_v32 }
 0x176   :  { %v83_v35 = vrot.slane %v82_v34, 2 }
 0x178   :  { %v84_v36 = vadd.f32 %v83_v35, %v82_v34 }
 0x17a   :  { %v85_v37 = vrot.slane %v84_v36, 1 }
 0x17c   :  { %v86_v38 = vadd.f32 %v85_v37, %v84_v36 }
 0x17e   :  { %309 = vpush %v86_v38 }
 0x1af   :  { %s310_s24 = spop %309 }
 0x1b0   :  { %p96_p6 = scmp.gt.f32.partialorder %s310_s24, 0.0  ;;  %s113_s25 = smul.f32 0.5, %s310_s24 }
 0x1b2   :  { %s97_s26 = scalar_select %p96_p6, 1, 0 }
 0x1b3   :  { %115 = sst [smem:[#allocation10 + $0x1]] %s113_s25 }
 0x1b4   :  { %v98_v41 = vstv %s97_s26 }
 0x1b5   :  { %vm99_vm5 = vcmp.eq.s32.totalorder %v98_v41, 1 }
 0x1b6   :  { %v100_v42 = vsel %vm99_vm5, %v90_v29, %v464_v0  ;;  %v101_v43 = vsel %vm99_vm5, %v91_v30, %v466_v1 }
 0x1b7   :  { %vm116_vm6 = vcmp.ge.f32.partialorder %v100_v42, %v94_v44  ;;  %vm117_vm7 = vcmp.ge.f32.partialorder %v101_v43, %v95_v45  ;;  %v132_v46 = vsub.f32 %v100_v42, %v94_v44  ;;  %v133_v47 = vsub.f32 %v101_v43, %v95_v45 }
 0x1b8   :  { %v279_v48 = vsel %vm116_vm6, 1.0, %v425_v2  ;;  %v280_v49 = vsel %vm117_vm7, 1.0, %v425_v2  ;;  %v138_v63 = vsel %vm116_vm6, %v136_v61, 0.125  ;;  %v139_v3 = vsel %vm117_vm7, %v137_v62, 0.125 }
 0x1b9   :  { %v122_v50 = vadd.f32 %v280_v49, %v279_v48  ;;  %v134_v51 = vsel %vm116_vm6, %v132_v46, %v100_v42  ;;  %v135_v52 = vsel %vm117_vm7, %v133_v47, %v101_v43  ;;  %v302_v53 = vpack.c.bf16 %v280_v49, %v279_v48 }
 0x1ba   :  { %v180_v5 = vmul.f32 2.0, %v138_v63  ;;  %v181_v6 = vmul.f32 2.0, %v139_v3 }
 0x1bb   :  { %303 = vst [vmem:[#allocation6 + $0x10] sm:$0xff] %v302_v53   ;;  %123 = vadd.xlane.f32.xlu1 %v122_v50 }
 0x244   :  { %v124_v54 = vpop.xlane.xlu1 %123 }
 0x245   :  { %v125_v55 = vrot.slane %v124_v54, 4 }
 0x247   :  { %v126_v56 = vadd.f32 %v125_v55, %v124_v54 }
 0x249   :  { %v127_v57 = vrot.slane %v126_v56, 2 }
 0x24b   :  { %v128_v58 = vadd.f32 %v127_v57, %v126_v56 }
 0x24d   :  { %v129_v59 = vrot.slane %v128_v58, 1 }
 0x24f   :  { %v130_v60 = vadd.f32 %v129_v59, %v128_v58 }
 0x251   :  { %311 = vpush %v130_v60 }
 0x282   :  { %s312_s27 = spop %311 }
 0x283   :  { %p140_p7 = scmp.gt.f32.partialorder %s312_s27, 0.0  ;;  %s157_s28 = smul.f32 0.5, %s312_s27 }
 0x285   :  { %s141_s29 = scalar_select %p140_p7, 1, 0 }
 0x286   :  { %159 = sst [smem:[#allocation10 + $0x2]] %s157_s28 }
 0x287   :  { %v142_v4 = vstv %s141_s29 }
 0x288   :  { %vm143_vm8 = vcmp.eq.s32.totalorder %v142_v4, 1 }
 0x289   :  { %v144_v7 = vsel %vm143_vm8, %v134_v51, %v464_v0  ;;  %v145_v8 = vsel %vm143_vm8, %v135_v52, %v466_v1 }
 0x28a   :  { %v176_v9 = vsub.f32 %v144_v7, %v138_v63  ;;  %v177_v10 = vsub.f32 %v145_v8, %v139_v3  ;;  %vm160_vm9 = vcmp.ge.f32.partialorder %v144_v7, %v138_v63  ;;  %vm161_vm10 = vcmp.ge.f32.partialorder %v145_v8, %v139_v3 }
 0x28b   :  { %v283_v11 = vsel %vm160_vm9, 1.0, %v425_v2  ;;  %v284_v12 = vsel %vm161_vm10, 1.0, %v425_v2  ;;  %v182_v13 = vsel %vm160_vm9, %v180_v5, 0.125  ;;  %v183_v14 = vsel %vm161_vm10, %v181_v6, 0.125 }
 0x28c   :  { %v166_v15 = vadd.f32 %v284_v12, %v283_v11  ;;  %v305_v16 = vpack.c.bf16 %v284_v12, %v283_v11  ;;  %v178_v17 = vsel %vm160_vm9, %v176_v9, %v144_v7  ;;  %v179_v18 = vsel %vm161_vm10, %v177_v10, %v145_v8  ;;  %206 = vst [vmem:[#allocation9] sm:$0xff] %v182_v13 }
 0x28d   :  { %207 = vst [vmem:[#allocation9 + $0x8] sm:$0xff] %v183_v14 }
 0x28e   :  { %306 = vst [vmem:[#allocation6 + $0x18] sm:$0xff] %v305_v16   ;;  %167 = vadd.xlane.f32.xlu1 %v166_v15 }
 0x28f   :  { %357 = shalt.err (!%p354_p12)
}
 0x290   :  { %s428_s7 = smov 64   ;;  %s429_s8 = smov 4  }
 0x291   :  { %219 = dma.vmem_to_hbm [thread:$0]  %s214_s5, 512, %s533_s1, [#allocation4], %s428_s7, %s428_s7, %s429_s8  }
 0x292   :  { %s430_s13 = smov [#allocation7]   ;;  %s431_s16 = smov [#allocation9]  }
 0x293   :  { %s225_s14 = sshll.u32 %s430_s13, 4  ;;  %s237_s17 = sshll.u32 %s431_s16, 4  ;;  %s226_s14 = int_to_ptr.vmem [resolvable:$true] %s225_s14  ;;  %s238_s17 = int_to_ptr.vmem [resolvable:$true] %s237_s17 }
 0x294   :  { %s432_s20 = smov [#allocation10]   ;;  %s374_s0 = scalar_lea.vmem %s226_s14, 256 }
 0x295   :  { %p375_p0 = scmp.ne.s32.totalorder %s226_s14, %s374_s0  ;;  %p379_p1 = scmp.lt.s32.totalorder %s226_s14, %s226_s14 }
 0x296   :  { %p380_p2 = scmp.lt.s32.totalorder %s374_s0, %s374_s0 }
 0x298   :  { %p381_p3 = por %p380_p2, %p379_p1 }
 0x29a   :  { %p382_p4 = pnand %p381_p3, %p375_p0 }
 0x317   :  { %v168_v2 = vpop.xlane.xlu1 %167 }
 0x318   :  { %v169_v19 = vrot.slane %v168_v2, 4 }
 0x31a   :  { %v170_v20 = vadd.f32 %v169_v19, %v168_v2 }
 0x31c   :  { %v171_v21 = vrot.slane %v170_v20, 2 }
 0x31e   :  { %v172_v22 = vadd.f32 %v171_v21, %v170_v20 }
 0x320   :  { %v173_v23 = vrot.slane %v172_v22, 1 }
 0x322   :  { %v174_v24 = vadd.f32 %v173_v23, %v172_v22 }
 0x324   :  { %313 = vpush %v174_v24 }
 0x355   :  { %s314_s11 = spop %313 }
 0x356   :  { %p184_p13 = scmp.gt.f32.partialorder %s314_s11, 0.0  ;;  %s201_s12 = smul.f32 0.5, %s314_s11 }
 0x358   :  { %s185_s15 = scalar_select %p184_p13, 1, 0 }
 0x359   :  { %203 = sst [smem:[#allocation10 + $0x3]] %s201_s12 }
 0x35a   :  { %v186_v25 = vstv %s185_s15  ;;  %251 = dma.smem_to_hbm %s432_s20, 16, %s536_s4, [#allocation5]  }
 0x35b   :  { %vm187_vm11 = vcmp.eq.s32.totalorder %v186_v25, 1 }
 0x35c   :  { %v188_v26 = vsel %vm187_vm11, %v178_v17, %v464_v0  ;;  %v189_v27 = vsel %vm187_vm11, %v179_v18, %v466_v1 }
 0x35d   :  { %204 = vst [vmem:[#allocation7] sm:$0xff] %v188_v26  ;;  %205 = vst [vmem:[#allocation7 + $0x8] sm:$0xff] %v189_v27 }
 0x35e   :  { %385 = shalt.err (!%p382_p4)
}
 0x35f   :  { %231 = dma.vmem_to_hbm [thread:$0]  %s226_s14, 256, %s534_s2, [#allocation8], %s423_s18, %s423_s18, %s424_s19  }
 0x360   :  { %s394_s23 = scalar_lea.vmem %s238_s17, 256  ;;  %p399_p6 = scmp.lt.s32.totalorder %s238_s17, %s238_s17 }
 0x361   :  { %p395_p5 = scmp.ne.s32.totalorder %s238_s17, %s394_s23  ;;  %p400_p7 = scmp.lt.s32.totalorder %s394_s23, %s394_s23 }
 0x363   :  { %p401_p8 = por %p400_p7, %p399_p6 }
 0x365   :  { %p402_p9 = pnand %p401_p8, %p395_p5 }
 0x367   :  { %405 = shalt.err (!%p402_p9)
}
 0x368   :  { %243 = dma.vmem_to_hbm [thread:$0]  %s238_s17, 256, %s535_s3, [#allocation8], %s423_s18, %s423_s18, %s424_s19  }
 0x369   :  { %416 = dma.done.wait [#allocation4], 512  }
 0x36a   :  { %417 = vsyncadd [#allocation4], 4294966784 }
 0x36b   :  { %418 = dma.done.wait [#allocation8], 512  }
 0x36c   :  { %419 = vsyncadd [#allocation8], 4294966784 }
 0x36d   :  { %420 = dma.done.wait [#allocation5], 16  }
 0x36e   :  { %421 = vsyncadd [#allocation5], 4294967280 }
 0x36f   :  { %264 = sfence }
 0x370   :  { %265 = vsyncpa [#allocation3], 1 }
 0x371   :  { %266 = vsyncpa [#allocation4], 1 }
 0x372   :  { %267 = vsyncpa [#allocation8], 1 }
 0x373   :  { %268 = vsyncpa [#allocation5], 1 }

</bundles_post_ra>
